<compile_context>
chip_gen: v6e
topology: v6e:2x2x1
jax: 0.10.0
libtpu: 0.0.40
codegen_flags: <defaults>
</compile_context>

<pallas_src>
import functools

import jax
import jax.numpy as jnp
from jax.experimental import pallas as pl
from jax.experimental.pallas import tpu as pltpu


def policy_kernel(x_ref, w1_ref, b1_ref, w2_ref, b2_ref, o_ref):
    # layer1: Linear(D -> H) on the MXU (bf16 inputs, f32 accumulation) + bias + ReLU.
    h = jnp.dot(x_ref[...], w1_ref[...], preferred_element_type=jnp.float32)
    h = jnp.maximum(h + b1_ref[...], 0.0)              # (B, H) + (1, H) broadcast, VPU

    # layer2: Linear(H -> A). A is tiny but the MXU is idle anyway; bf16 in, f32 acc.
    s = jnp.dot(h.astype(jnp.bfloat16), w2_ref[...],
                preferred_element_type=jnp.float32)
    s = s + b2_ref[...]                                 # (B, A) + (1, A) broadcast

    # Numerically stable softmax over dim=1 (actions); divide goes to the EUP slot.
    s = s - jnp.max(s, axis=-1, keepdims=True)
    e = jnp.exp(s)
    inv = pl.reciprocal(jnp.sum(e, axis=-1, keepdims=True), approx=True)
    o_ref[...] = e * inv


@functools.partial(jax.jit, static_argnames=("block_b",))
def policy_forward(x, w1, b1, w2, b2, *, block_b=128):
    """Fused Linear -> ReLU -> Linear -> softmax (PolicyNetwork.forward)."""
    B, D = x.shape
    H = w1.shape[1]
    A = w2.shape[1]

    # bf16 MXU inputs; everything else (bias add, softmax, output) stays f32.
    x = x.astype(jnp.bfloat16)
    w1 = w1.astype(jnp.bfloat16)
    w2 = w2.astype(jnp.bfloat16)
    b1 = b1.astype(jnp.float32).reshape(1, H)
    b2 = b2.astype(jnp.float32).reshape(1, A)

    out_shape = jax.ShapeDtypeStruct((B, A), jnp.float32)

    if B <= block_b:
        # Single resident block in VMEM: no grid, no software pipeline, no
        # double-buffered weight copies — removes the pure-overhead 1-point pipeline.
        vmem = pl.BlockSpec(memory_space=pltpu.MemorySpace.VMEM)
        return pl.pallas_call(
            policy_kernel,
            out_shape=out_shape,
            in_specs=[vmem, vmem, vmem, vmem, vmem],
            out_specs=vmem,
        )(x, w1, b1, w2, b2)

    # Large batch: tile the independent batch axis and mark it "parallel" so v7x
    # shards it across both TensorCores. Weights/biases use a constant block index
    # so they stay resident across grid steps.
    if B % block_b != 0:
        raise ValueError(f"batch {B} must be a multiple of block_b={block_b}")
    return pl.pallas_call(
        policy_kernel,
        out_shape=out_shape,
        grid=(B // block_b,),
        in_specs=[
            pl.BlockSpec((block_b, D), lambda i: (i, 0)),
            pl.BlockSpec((D, H), lambda i: (0, 0)),
            pl.BlockSpec((1, H), lambda i: (0, 0)),
            pl.BlockSpec((H, A), lambda i: (0, 0)),
            pl.BlockSpec((1, A), lambda i: (0, 0)),
        ],
        out_specs=pl.BlockSpec((block_b, A), lambda i: (i, 0)),
        compiler_params=pltpu.CompilerParams(
            dimension_semantics=("parallel",),
        ),
    )(x, w1, b1, w2, b2)


def reference_forward(x, w1, b1, w2, b2):
    # Pure-JAX reference with the same precision choices as the kernel
    # (bf16 matmul inputs, f32 accumulation, f32 bias/softmax).
    h = jnp.dot(x.astype(jnp.bfloat16), w1.astype(jnp.bfloat16),
                preferred_element_type=jnp.float32) + b1
    h = jnp.maximum(h, 0.0)
    s = jnp.dot(h.astype(jnp.bfloat16), w2.astype(jnp.bfloat16),
                preferred_element_type=jnp.float32) + b2
    return jax.nn.softmax(s, axis=1)


def init_params(key, input_dim, hidden_dim, num_actions):
    # Mimics torch.nn.Linear default init: U(-1/sqrt(fan_in), +1/sqrt(fan_in)).
    k1, k2, k3, k4 = jax.random.split(key, 4)
    bound1 = 1.0 / float(input_dim) ** 0.5
    bound2 = 1.0 / float(hidden_dim) ** 0.5
    w1 = jax.random.uniform(k1, (input_dim, hidden_dim), jnp.float32, -bound1, bound1)
    b1 = jax.random.uniform(k2, (1, hidden_dim), jnp.float32, -bound1, bound1)
    w2 = jax.random.uniform(k3, (hidden_dim, num_actions), jnp.float32, -bound2, bound2)
    b2 = jax.random.uniform(k4, (1, num_actions), jnp.float32, -bound2, bound2)
    return w1, b1, w2, b2


if __name__ == "__main__":
    # Small but vreg/MXU-friendly shapes: batch >= 128, hidden padded to a
    # lane-dense 128, A = 2 actions as in the Pong policy network.
    D, H, A = 256, 128, 2

    key = jax.random.PRNGKey(0)
    kx, kp = jax.random.split(key)
    w1, b1, w2, b2 = init_params(kp, D, H, A)

    # Path 1: moderate batch -> gridless single resident block.
    B1 = 128
    x1 = jax.random.normal(kx, (B1, D), dtype=jnp.float32)
    out1 = jax.block_until_ready(policy_forward(x1, w1, b1, w2, b2, block_b=128))
    ref1 = reference_forward(x1, w1, b1, w2, b2)
    assert out1.shape == (B1, A)
    assert jnp.allclose(out1, ref1, atol=5e-3), "mismatch vs reference (gridless path)"
    assert jnp.allclose(jnp.sum(out1, axis=1), 1.0, atol=5e-3), "rows must sum to ~1"

    # Path 2: larger batch -> batch-tiled "parallel" grid (v7x megacore split).
    B2 = 256
    x2 = jax.random.normal(jax.random.fold_in(kx, 1), (B2, D), dtype=jnp.float32)
    out2 = jax.block_until_ready(policy_forward(x2, w1, b1, w2, b2, block_b=128))
    ref2 = reference_forward(x2, w1, b1, w2, b2)
    assert out2.shape == (B2, A)
    assert jnp.allclose(out2, ref2, atol=5e-3), "mismatch vs reference (gridded path)"
    assert jnp.allclose(jnp.sum(out2, axis=1), 1.0, atol=5e-3), "rows must sum to ~1"

    print("KERNEL_OK")
</pallas_src>

<mosaic_0001>
module attributes {stable_mosaic.version = 11 : i64} {
  func.func @policy_kernel(%arg0: memref<128x256xbf16, #tpu.memory_space<vmem>>, %arg1: memref<256x128xbf16, #tpu.memory_space<vmem>>, %arg2: memref<1x128xf32, #tpu.memory_space<vmem>>, %arg3: memref<128x2xbf16, #tpu.memory_space<vmem>>, %arg4: memref<1x2xf32, #tpu.memory_space<vmem>>, %arg5: memref<128x2xf32, #tpu.memory_space<vmem>>) attributes {dimension_semantics = [], scalar_prefetch = 0 : i64, scratch_operands = 0 : i64, tpu.core_type = #tpu.core_type<tc>} {
    %c0 = arith.constant 0 : index
    %c0_0 = arith.constant 0 : index
    %0 = vector.load %arg0[%c0, %c0_0] : memref<128x256xbf16, #tpu.memory_space<vmem>>, vector<128x256xbf16>
    %c0_1 = arith.constant 0 : index
    %c0_2 = arith.constant 0 : index
    %1 = vector.load %arg1[%c0_1, %c0_2] : memref<256x128xbf16, #tpu.memory_space<vmem>>, vector<256x128xbf16>
    %cst = arith.constant dense<0.000000e+00> : vector<128x128xf32>
    %2 = tpu.matmul %0, %1, %cst {dimension_numbers = #tpu.dot_dimension_numbers<[1], [0], [0], [1], [0, 0, 1, 1], [], []>} : vector<128x256xbf16>, vector<256x128xbf16>, vector<128x128xf32> -> vector<128x128xf32>
    %c0_3 = arith.constant 0 : index
    %c0_4 = arith.constant 0 : index
    %3 = vector.load %arg2[%c0_3, %c0_4] : memref<1x128xf32, #tpu.memory_space<vmem>>, vector<1x128xf32>
    %4 = vector.broadcast %3 : vector<1x128xf32> to vector<128x128xf32>
    %5 = arith.addf %2, %4 : vector<128x128xf32>
    %cst_5 = arith.constant 0.000000e+00 : f32
    %6 = vector.broadcast %cst_5 : f32 to vector<128x128xf32>
    %7 = arith.maximumf %5, %6 : vector<128x128xf32>
    %8 = arith.truncf %7 : vector<128x128xf32> to vector<128x128xbf16>
    %c0_6 = arith.constant 0 : index
    %c0_7 = arith.constant 0 : index
    %9 = vector.load %arg3[%c0_6, %c0_7] : memref<128x2xbf16, #tpu.memory_space<vmem>>, vector<128x2xbf16>
    %cst_8 = arith.constant dense<0.000000e+00> : vector<128x2xf32>
    %10 = tpu.matmul %8, %9, %cst_8 {dimension_numbers = #tpu.dot_dimension_numbers<[1], [0], [0], [1], [0, 0, 1, 1], [], []>} : vector<128x128xbf16>, vector<128x2xbf16>, vector<128x2xf32> -> vector<128x2xf32>
    %c0_9 = arith.constant 0 : index
    %c0_10 = arith.constant 0 : index
    %11 = vector.load %arg4[%c0_9, %c0_10] : memref<1x2xf32, #tpu.memory_space<vmem>>, vector<1x2xf32>
    %12 = vector.broadcast %11 : vector<1x2xf32> to vector<128x2xf32>
    %13 = arith.addf %10, %12 : vector<128x2xf32>
    %cst_11 = arith.constant dense<0xFF800000> : vector<128xf32>
    %14 = vector.multi_reduction <maximumf>, %13, %cst_11 [1] : vector<128x2xf32> to vector<128xf32>
    %15 = vector.shape_cast %14 : vector<128xf32> to vector<128x1xf32>
    %16 = vector.broadcast %15 : vector<128x1xf32> to vector<128x2xf32>
    %17 = arith.subf %13, %16 : vector<128x2xf32>
    %18 = math.exp %17 : vector<128x2xf32>
    %cst_12 = arith.constant dense<0.000000e+00> : vector<128xf32>
    %19 = vector.multi_reduction <add>, %18, %cst_12 [1] : vector<128x2xf32> to vector<128xf32>
    %20 = vector.shape_cast %19 : vector<128xf32> to vector<128x1xf32>
    %21 = tpu.reciprocal %20 {approx = true} : vector<128x1xf32> -> vector<128x1xf32>
    %22 = vector.broadcast %21 : vector<128x1xf32> to vector<128x2xf32>
    %23 = arith.mulf %18, %22 : vector<128x2xf32>
    %c0_13 = arith.constant 0 : index
    %c0_14 = arith.constant 0 : index
    %24 = vector.load %arg5[%c0_13, %c0_14] : memref<128x2xf32, #tpu.memory_space<vmem>>, vector<128x2xf32>
    tpu.vector_store %arg5[%c0_13, %c0_14], %23 {strides = array<i32>} : memref<128x2xf32, #tpu.memory_space<vmem>>, vector<128x2xf32>,
    return
  }
}

</mosaic_0001>

<bundles_post_ra>
// kernel: policy_forward.1
= control target key start
LH: loop header
LB: loop body
LE: loop exit
PB: predicated region body
PF: predicated region fallthrough
CT: control target
= control target key end

     0   :  { %vm541_vm0 = vcmask 15360   ;;  %s1402_s1 = inlined_call_operand.vmem [shape: bf16[256,128], index: 1, kind: input, shape index: {}]   ;;  %s1403_s0 = inlined_call_operand.vmem [shape: bf16[128,256], index: 0, kind: input, shape index: {}]   ;;  %s1404_s3 = inlined_call_operand.vmem [shape: bf16[128,2], index: 3, kind: input, shape index: {}]   ;;  %s1405_s2 = inlined_call_operand.vmem [shape: f32[1,128], index: 2, kind: input, shape index: {}]   ;;  %s1406_s4 = inlined_call_operand.vmem [shape: f32[1,2], index: 4, kind: input, shape index: {}]   ;;  %s1407_s5 = inlined_call_operand.vmem [shape: f32[128,2], index: 5, kind: output, shape index: {}]  }
   0x1   :  { %v892_v0 = vld [vmem:[%s1402_s1 + $0x78] sm:$0xff]   ;;  %v894_v2 = vld [vmem:[%s1402_s1 + $0x70] sm:$0xff]   ;;  %v896_v4 = vld [vmem:[%s1402_s1 + $0x68] sm:$0xff]  }
   0x2   :  { %v893_v1 = vld [vmem:[%s1402_s1 + $0x38] sm:$0xff]   ;;  %780 = vmatprep.subr.bf16.mxu0 %v892_v0  ;;  %v895_v3 = vld [vmem:[%s1402_s1 + $0x30] sm:$0xff]   ;;  %v897_v5 = vld [vmem:[%s1402_s1 + $0x28] sm:$0xff]  }
   0x3   :  { %781 = vmatpush3.bf16.msra.mxu0 %v893_v1  ;;  %v898_v6 = vld [vmem:[%s1402_s1 + $0x60] sm:$0xff]   ;;  %v900_v8 = vld [vmem:[%s1402_s1 + $0x58] sm:$0xff]   ;;  %v902_v10 = vld [vmem:[%s1402_s1 + $0x50] sm:$0xff]  }
   0x4   :  { %782 = vmatprep.subr.bf16.mxu0 %v894_v2  ;;  %v899_v7 = vld [vmem:[%s1402_s1 + $0x20] sm:$0xff]   ;;  %v901_v9 = vld [vmem:[%s1402_s1 + $0x18] sm:$0xff]   ;;  %v903_v12 = vld [vmem:[%s1402_s1 + $0x10] sm:$0xff]  }
   0x5   :  { %v910_v11 = vld [vmem:[%s1403_s0 + $0x4] ss:$8 sps:$4 sm:$0xff]   ;;  %v932_v17 = vld [vmem:[%s1404_s3 + $0x38] sm:$0xff]   ;;  %v908_v18 = vld [vmem:[%s1403_s0] ss:$8 sps:$4 sm:$0xff]  }
   0x6   :  { %284 = vmatprep.mubr.bf16.mxu0 %v910_v11  ;;  %v904_v13 = vld [vmem:[%s1402_s1 + $0x48] sm:$0xff]   ;;  %v906_v15 = vld [vmem:[%s1402_s1 + $0x40] sm:$0xff]   ;;  %v933_v19 = vld [vmem:[%s1404_s3 + $0x30] sm:$0xff]   ;;  %860 = vmatprep.subr.bf16.mxu1 %v932_v17 }
   0x7   :  { %783 = vmatpush3.bf16.msra.mxu0 %v895_v3  ;;  %v905_v14 = vld [vmem:[%s1402_s1 + $0x8] sm:$0xff]   ;;  %v907_v16 = vld [vmem:[%s1402_s1] sm:$0xff]   ;;  %v911_v20 = vld [vmem:[%s1403_s0 + $0x14] ss:$8 sps:$4 sm:$0xff]   ;;  %861 = vmatpush3.bf16.msra.mxu1 %v932_v17 }
   0x8   :  { %784 = vmatprep.subr.bf16.mxu0 %v896_v4  ;;  %v934_v21 = vld [vmem:[%s1404_s3 + $0x28] sm:$0xff]   ;;  %862 = vmatprep.subr.bf16.mxu1 %v933_v19  ;;  %v913_v22 = vld [vmem:[%s1403_s0 + $0x10] ss:$8 sps:$4 sm:$0xff]   ;;  %v917_v25 = vld [vmem:[%s1403_s0 + $0x34] ss:$8 sps:$4 sm:$0xff]  }
   0x9   :  { %v914_v23 = vld [vmem:[%s1403_s0 + $0x24] ss:$8 sps:$4 sm:$0xff]   ;;  %v916_v24 = vld [vmem:[%s1403_s0 + $0x20] ss:$8 sps:$4 sm:$0xff]   ;;  %v919_v26 = vld [vmem:[%s1403_s0 + $0x30] ss:$8 sps:$4 sm:$0xff]  }
   0xa   :  { %v920_v27 = vld [vmem:[%s1403_s0 + $0x44] ss:$8 sps:$4 sm:$0xff]   ;;  %v922_v28 = vld [vmem:[%s1403_s0 + $0x40] ss:$8 sps:$4 sm:$0xff]   ;;  %v923_v29 = vld [vmem:[%s1403_s0 + $0x54] ss:$8 sps:$4 sm:$0xff]  }
   0xb   :  { %785 = vmatpush3.bf16.msra.mxu0 %v897_v5  ;;  %863 = vmatpush3.bf16.msra.mxu1 %v933_v19  ;;  %v925_v30 = vld [vmem:[%s1403_s0 + $0x50] ss:$8 sps:$4 sm:$0xff]   ;;  %v926_v31 = vld [vmem:[%s1403_s0 + $0x64] ss:$8 sps:$4 sm:$0xff]   ;;  %v928_v32 = vld [vmem:[%s1403_s0 + $0x60] ss:$8 sps:$4 sm:$0xff]  }
   0xc   :  { %786 = vmatprep.subr.bf16.mxu0 %v898_v6  ;;  %864 = vmatprep.subr.bf16.mxu1 %v934_v21  ;;  %v929_v33 = vld [vmem:[%s1403_s0 + $0x74] ss:$8 sps:$4 sm:$0xff]   ;;  %v931_v34 = vld [vmem:[%s1403_s0 + $0x70] ss:$8 sps:$4 sm:$0xff]   ;;  %v935_v35 = vld [vmem:[%s1404_s3 + $0x20] sm:$0xff]  }
   0xd   :  { %v936_v36 = vld [vmem:[%s1404_s3 + $0x18] sm:$0xff]   ;;  %v937_v37 = vld [vmem:[%s1404_s3 + $0x10] sm:$0xff]   ;;  %v938_v38 = vld [vmem:[%s1404_s3 + $0x8] sm:$0xff]  }
   0xe   :  { %v939_v39 = vld [vmem:[%s1404_s3] sm:$0xff]  }
   0xf   :  { %787 = vmatpush3.bf16.msra.mxu0 %v899_v7  ;;  %865 = vmatpush3.bf16.msra.mxu1 %v934_v21  ;;  %v1157_v44 = vld [vmem:[%s1405_s2] ss:$0 sm:$0xff] }
  0x10   :  { %788 = vmatprep.subr.bf16.mxu0 %v900_v8  ;;  %866 = vmatprep.subr.bf16.mxu1 %v935_v35 }
  0x13   :  { %789 = vmatpush3.bf16.msra.mxu0 %v901_v9  ;;  %867 = vmatpush3.bf16.msra.mxu1 %v935_v35 }
  0x14   :  { %790 = vmatprep.subr.bf16.mxu0 %v902_v10  ;;  %868 = vmatprep.subr.bf16.mxu1 %v936_v36 }
  0x17   :  { %791 = vmatpush3.bf16.msra.mxu0 %v903_v12  ;;  %869 = vmatpush3.bf16.msra.mxu1 %v936_v36 }
  0x18   :  { %792 = vmatprep.subr.bf16.mxu0 %v904_v13  ;;  %870 = vmatprep.subr.bf16.mxu1 %v937_v37 }
  0x1b   :  { %793 = vmatpush3.bf16.msra.mxu0 %v905_v14  ;;  %871 = vmatpush3.bf16.msra.mxu1 %v937_v37 }
  0x1c   :  { %794 = vmatprep.subr.bf16.mxu0 %v906_v15  ;;  %872 = vmatprep.subr.bf16.mxu1 %v938_v38 }
  0x1f   :  { %795 = vmatpush3.bf16.msra.mxu0 %v907_v16  ;;  %873 = vmatpush3.bf16.msra.mxu1 %v938_v38 }
  0x20   :  { %874 = vmatprep.subr.bf16.mxu1 %v939_v39 }
  0x22   :  { %285 = vmatmul.mubr.bf16.vlgmr.msra.gmra.mxu0 %v908_v18 }
  0x23   :  { %292 = vmatprep.mubr.bf16.mxu0 %v911_v20  ;;  %875 = vmatpush3.bf16.msra.mxu1 %v939_v39 }
  0x2a   :  { %293 = vmatmul.mubr.bf16.gmra.mxu0 %v913_v22 }
  0x2b   :  { %300 = vmatprep.mubr.bf16.mxu0 %v914_v23 }
  0x32   :  { %301 = vmatmul.mubr.bf16.gmra.mxu0 %v916_v24 }
  0x33   :  { %308 = vmatprep.mubr.bf16.mxu0 %v917_v25 }
  0x3a   :  { %309 = vmatmul.mubr.bf16.gmra.mxu0 %v919_v26 }
  0x3b   :  { %316 = vmatprep.mubr.bf16.mxu0 %v920_v27 }
  0x42   :  { %317 = vmatmul.mubr.bf16.gmra.mxu0 %v922_v28 }
  0x43   :  { %324 = vmatprep.mubr.bf16.mxu0 %v923_v29 }
  0x4a   :  { %325 = vmatmul.mubr.bf16.gmra.mxu0 %v925_v30 }
  0x4b   :  { %332 = vmatprep.mubr.bf16.mxu0 %v926_v31 }
  0x52   :  { %333 = vmatmul.mubr.bf16.gmra.mxu0 %v928_v32 }
  0x53   :  { %340 = vmatprep.mubr.bf16.mxu0 %v929_v33 }
  0x5a   :  { %341 = vmatmul.mubr.bf16.gmra.mxu0 %v931_v34 }
  0xe2   :  { %v796_v40 = vpop.f32.mrf.mxu0 }
  0xe4   :  { %v797_v41 = vpop.f32.mrf.mxu0 }
  0xe5   :  { %v798_v42 = vadd.f32 %v797_v41, %v796_v40 }
  0xe6   :  { %v799_v43 = vpop.f32.mrf.mxu0 }
  0xe7   :  { %v287_v47 = vadd.f32 %v798_v42, %v1157_v44 }
  0xe8   :  { %v800_v45 = vpop.f32.mrf.mxu0 }
  0xe9   :  { %v801_v46 = vadd.f32 %v800_v45, %v799_v43  ;;  %v349_v52 = vmax.f32 %v287_v47, 0.0 }
  0xea   :  { %v802_v48 = vpop.f32.mrf.mxu0 }
  0xeb   :  { %v290_v49 = vadd.f32 %v801_v46, %v1157_v44 }
  0xec   :  { %v803_v50 = vpop.f32.mrf.mxu0 }
  0xed   :  { %v804_v51 = vadd.f32 %v803_v50, %v802_v48  ;;  %v350_v53 = vmax.f32 %v290_v49, 0.0 }
  0xee   :  { %v805_v54 = vpop.f32.mrf.mxu0 }
  0xef   :  { %v365_v55 = vpack.c.bf16 %v350_v53, %v349_v52  ;;  %v295_v57 = vadd.f32 %v804_v51, %v1157_v44 }
  0xf0   :  { %v806_v56 = vpop.f32.mrf.mxu0 }
  0xf1   :  { %v807_v58 = vadd.f32 %v806_v56, %v805_v54  ;;  %876 = vmatprep.mubr.bf16.mxu1 %v365_v55  ;;  %v351_v62 = vmax.f32 %v295_v57, 0.0 }
  0xf2   :  { %v808_v59 = vpop.f32.mrf.mxu0 }
  0xf3   :  { %v298_v60 = vadd.f32 %v807_v58, %v1157_v44 }
  0xf4   :  { %v809_v61 = vpop.f32.mrf.mxu0 }
  0xf5   :  { %v352_v63 = vmax.f32 %v298_v60, 0.0  ;;  %v810_v0 = vadd.f32 %v809_v61, %v808_v59 }
  0xf6   :  { %v811_v1 = vpop.f32.mrf.mxu0 }
  0xf7   :  { %v366_v2 = vpack.c.bf16 %v352_v63, %v351_v62  ;;  %v303_v4 = vadd.f32 %v810_v0, %v1157_v44 }
  0xf8   :  { %v812_v3 = vpop.f32.mrf.mxu0 }
  0xf9   :  { %v813_v5 = vadd.f32 %v812_v3, %v811_v1  ;;  %877 = vmatmul.mubr.bf16.vlgmr.msra.gmra.mxu1 %v366_v2  ;;  %v353_v9 = vmax.f32 %v303_v4, 0.0  ;;  %v771_v2 = vld [vmem:[%s1406_s4] ss:$0 sm:$0xff] }
  0xfa   :  { %v814_v6 = vpop.f32.mrf.mxu0 }
  0xfb   :  { %v306_v7 = vadd.f32 %v813_v5, %v1157_v44 }
  0xfc   :  { %v815_v8 = vpop.f32.mrf.mxu0 }
  0xfd   :  { %v354_v10 = vmax.f32 %v306_v7, 0.0  ;;  %v816_v11 = vadd.f32 %v815_v8, %v814_v6 }
  0xfe   :  { %v817_v12 = vpop.f32.mrf.mxu0 }
  0xff   :  { %v367_v13 = vpack.c.bf16 %v354_v10, %v353_v9  ;;  %v311_v15 = vadd.f32 %v816_v11, %v1157_v44 }
 0x100   :  { %v818_v14 = vpop.f32.mrf.mxu0 }
 0x101   :  { %v819_v16 = vadd.f32 %v818_v14, %v817_v12  ;;  %880 = vmatprep.mubr.bf16.mxu1 %v367_v13  ;;  %v355_v20 = vmax.f32 %v311_v15, 0.0 }
 0x102   :  { %v820_v17 = vpop.f32.mrf.mxu0 }
 0x103   :  { %v314_v18 = vadd.f32 %v819_v16, %v1157_v44 }
 0x104   :  { %v821_v19 = vpop.f32.mrf.mxu0 }
 0x105   :  { %v356_v21 = vmax.f32 %v314_v18, 0.0  ;;  %v822_v22 = vadd.f32 %v821_v19, %v820_v17 }
 0x106   :  { %v823_v23 = vpop.f32.mrf.mxu0 }
 0x107   :  { %v368_v24 = vpack.c.bf16 %v356_v21, %v355_v20  ;;  %v319_v26 = vadd.f32 %v822_v22, %v1157_v44 }
 0x108   :  { %v824_v25 = vpop.f32.mrf.mxu0 }
 0x109   :  { %v825_v27 = vadd.f32 %v824_v25, %v823_v23  ;;  %881 = vmatmul.mubr.bf16.gmra.mxu1 %v368_v24  ;;  %v357_v31 = vmax.f32 %v319_v26, 0.0 }
 0x10a   :  { %v826_v28 = vpop.f32.mrf.mxu0 }
 0x10b   :  { %v322_v29 = vadd.f32 %v825_v27, %v1157_v44 }
 0x10c   :  { %v827_v30 = vpop.f32.mrf.mxu0 }
 0x10d   :  { %v358_v32 = vmax.f32 %v322_v29, 0.0  ;;  %v828_v33 = vadd.f32 %v827_v30, %v826_v28 }
 0x10e   :  { %v829_v34 = vpop.f32.mrf.mxu0 }
 0x10f   :  { %v369_v35 = vpack.c.bf16 %v358_v32, %v357_v31  ;;  %v327_v37 = vadd.f32 %v828_v33, %v1157_v44 }
 0x110   :  { %v830_v36 = vpop.f32.mrf.mxu0 }
 0x111   :  { %v831_v38 = vadd.f32 %v830_v36, %v829_v34  ;;  %884 = vmatprep.mubr.bf16.mxu1 %v369_v35  ;;  %v359_v42 = vmax.f32 %v327_v37, 0.0 }
 0x112   :  { %v832_v39 = vpop.f32.mrf.mxu0 }
 0x113   :  { %v330_v40 = vadd.f32 %v831_v38, %v1157_v44 }
 0x114   :  { %v833_v41 = vpop.f32.mrf.mxu0 }
 0x115   :  { %v360_v43 = vmax.f32 %v330_v40, 0.0  ;;  %v834_v45 = vadd.f32 %v833_v41, %v832_v39 }
 0x116   :  { %v835_v46 = vpop.f32.mrf.mxu0 }
 0x117   :  { %v370_v47 = vpack.c.bf16 %v360_v43, %v359_v42  ;;  %v335_v49 = vadd.f32 %v834_v45, %v1157_v44 }
 0x118   :  { %v836_v48 = vpop.f32.mrf.mxu0 }
 0x119   :  { %v837_v50 = vadd.f32 %v836_v48, %v835_v46  ;;  %885 = vmatmul.mubr.bf16.gmra.mxu1 %v370_v47  ;;  %v361_v54 = vmax.f32 %v335_v49, 0.0 }
 0x11a   :  { %v838_v51 = vpop.f32.mrf.mxu0 }
 0x11b   :  { %v338_v52 = vadd.f32 %v837_v50, %v1157_v44 }
 0x11c   :  { %v839_v53 = vpop.f32.mrf.mxu0 }
 0x11d   :  { %v362_v55 = vmax.f32 %v338_v52, 0.0  ;;  %v840_v56 = vadd.f32 %v839_v53, %v838_v51 }
 0x11e   :  { %v841_v57 = vpop.f32.mrf.mxu0 }
 0x11f   :  { %v371_v58 = vpack.c.bf16 %v362_v55, %v361_v54  ;;  %v343_v60 = vadd.f32 %v840_v56, %v1157_v44 }
 0x120   :  { %v842_v59 = vpop.f32.mrf.mxu0 }
 0x121   :  { %v843_v61 = vadd.f32 %v842_v59, %v841_v57  ;;  %888 = vmatprep.mubr.bf16.mxu1 %v371_v58  ;;  %v363_v63 = vmax.f32 %v343_v60, 0.0 }
 0x123   :  { %v346_v62 = vadd.f32 %v843_v61, %v1157_v44 }
 0x125   :  { %v364_v0 = vmax.f32 %v346_v62, 0.0 }
 0x127   :  { %v372_v1 = vpack.c.bf16 %v364_v0, %v363_v63 }
 0x129   :  { %889 = vmatmul.mubr.bf16.gmra.mxu1 %v372_v1 }
 0x1b9   :  { %v878_v3 = vpop.f32.mrf.mxu1 }
 0x1ba   :  { %v1178_v4 = vadd.f32 %v878_v3, %v771_v2 }
 0x1bb   :  { %v478_v5 = vpop.f32.mrf.mxu1 }
 0x1bc   :  { %v1180_v6 = vadd.f32 %v771_v2, %v478_v5  ;;  %v548_v7 = vsel %vm541_vm0, %v1178_v4, -inf }
 0x1bd   :  { %549 = vmax.xlane.f32.xlu1 %v548_v7  ;;  %v879_v44 = vpop.f32.mrf.mxu1 }
 0x1be   :  { %v1184_v8 = vadd.f32 %v879_v44, %v771_v2  ;;  %v542_v9 = vsel %vm541_vm0, %v1180_v6, -inf }
 0x1bf   :  { %v481_v10 = vpop.f32.mrf.mxu1  ;;  %543 = vmax.xlane.f32.xlu0 %v542_v9 }
 0x1c0   :  { %v1188_v11 = vadd.f32 %v771_v2, %v481_v10  ;;  %v551_v12 = vsel %vm541_vm0, %v1184_v8, -inf }
 0x1c1   :  { %552 = vmax.xlane.f32.xlu1 %v551_v12 }
 0x1c2   :  { %v545_v13 = vsel %vm541_vm0, %v1188_v11, -inf }
 0x1c3   :  { %546 = vmax.xlane.f32.xlu0 %v545_v13 }
 0x1c9   :  { %v882_v14 = vpop.f32.mrf.mxu1 }
 0x1ca   :  { %v1194_v15 = vadd.f32 %v882_v14, %v771_v2 }
 0x1cb   :  { %v494_v16 = vpop.f32.mrf.mxu1 }
 0x1cc   :  { %v1196_v17 = vadd.f32 %v771_v2, %v494_v16  ;;  %v560_v18 = vsel %vm541_vm0, %v1194_v15, -inf }
 0x1cd   :  { %v883_v19 = vpop.f32.mrf.mxu1  ;;  %561 = vmax.xlane.f32.xlu0 %v560_v18 }
 0x1ce   :  { %v1200_v20 = vadd.f32 %v883_v19, %v771_v2  ;;  %v554_v24 = vsel %vm541_vm0, %v1196_v17, -inf }
 0x1cf   :  { %v497_v21 = vpop.f32.mrf.mxu1 }
 0x1d0   :  { %v1202_v22 = vadd.f32 %v771_v2, %v497_v21  ;;  %v563_v23 = vsel %vm541_vm0, %v1200_v20, -inf }
 0x1d1   :  { %564 = vmax.xlane.f32.xlu1 %v563_v23  ;;  %555 = vmax.xlane.f32.xlu0 %v554_v24 }
 0x1d2   :  { %v557_v25 = vsel %vm541_vm0, %v1202_v22, -inf }
 0x1d5   :  { %558 = vmax.xlane.f32.xlu1 %v557_v25 }
 0x1d9   :  { %v886_v26 = vpop.f32.mrf.mxu1 }
 0x1da   :  { %v1210_v27 = vadd.f32 %v886_v26, %v771_v2 }
 0x1db   :  { %v510_v28 = vpop.f32.mrf.mxu1 }
 0x1dc   :  { %v1212_v29 = vadd.f32 %v771_v2, %v510_v28  ;;  %v572_v30 = vsel %vm541_vm0, %v1210_v27, -inf }
 0x1dd   :  { %v887_v31 = vpop.f32.mrf.mxu1  ;;  %573 = vmax.xlane.f32.xlu0 %v572_v30 }
 0x1de   :  { %v1216_v32 = vadd.f32 %v887_v31, %v771_v2  ;;  %v566_v36 = vsel %vm541_vm0, %v1212_v29, -inf }
 0x1df   :  { %v513_v33 = vpop.f32.mrf.mxu1 }
 0x1e0   :  { %v1218_v34 = vadd.f32 %v771_v2, %v513_v33  ;;  %v575_v35 = vsel %vm541_vm0, %v1216_v32, -inf }
 0x1e1   :  { %576 = vmax.xlane.f32.xlu1 %v575_v35  ;;  %567 = vmax.xlane.f32.xlu0 %v566_v36 }
 0x1e2   :  { %v569_v37 = vsel %vm541_vm0, %v1218_v34, -inf }
 0x1e5   :  { %570 = vmax.xlane.f32.xlu1 %v569_v37 }
 0x1e9   :  { %v890_v38 = vpop.f32.mrf.mxu1 }
 0x1ea   :  { %v1228_v42 = vadd.f32 %v890_v38, %v771_v2 }
 0x1eb   :  { %v526_v39 = vpop.f32.mrf.mxu1 }
 0x1ec   :  { %v1226_v40 = vadd.f32 %v771_v2, %v526_v39  ;;  %v584_v49 = vsel %vm541_vm0, %v1228_v42, -inf }
 0x1ed   :  { %v891_v41 = vpop.f32.mrf.mxu1 }
 0x1ee   :  { %v578_v43 = vsel %vm541_vm0, %v1226_v40, -inf  ;;  %v1234_v47 = vadd.f32 %v891_v41, %v771_v2 }
 0x1ef   :  { %v529_v45 = vpop.f32.mrf.mxu1  ;;  %579 = vmax.xlane.f32.xlu0 %v578_v43 }
 0x1f0   :  { %v1232_v46 = vadd.f32 %v771_v2, %v529_v45  ;;  %v587_v50 = vsel %vm541_vm0, %v1234_v47, -inf }
 0x1f2   :  { %v581_v48 = vsel %vm541_vm0, %v1232_v46, -inf }
 0x1f3   :  { %582 = vmax.xlane.f32.xlu1 %v581_v48  ;;  %585 = vmax.xlane.f32.xlu0 %v584_v49 }
 0x1f7   :  { %588 = vmax.xlane.f32.xlu1 %v587_v50 }
 0x246   :  { %v550_v51 = vpop.xlane.xlu1 %549 }
 0x247   :  { %v592_v52 = vsub.f32 %v1178_v4, %v550_v51 }
 0x248   :  { %v544_v53 = vpop.xlane.xlu0 %543 }
 0x249   :  { %v610_v54 = vmul.f32 1.442695, %v592_v52  ;;  %v590_v55 = vsub.f32 %v1180_v6, %v544_v53 }
 0x24a   :  { %v553_v56 = vpop.xlane.xlu1 %552 }
 0x24b   :  { %940 = vpow2.f32 %v610_v54  ;;  %v606_v57 = vmul.f32 1.442695, %v590_v55  ;;  %v593_v58 = vsub.f32 %v1184_v8, %v553_v56 }
 0x24c   :  { %v547_v59 = vpop.xlane.xlu0 %546 }
 0x24d   :  { %942 = vpow2.f32 %v606_v57  ;;  %v612_v60 = vmul.f32 1.442695, %v593_v58  ;;  %v591_v61 = vsub.f32 %v1188_v11, %v547_v59 }
 0x24f   :  { %944 = vpow2.f32 %v612_v60  ;;  %v608_v62 = vmul.f32 1.442695, %v591_v61 }
 0x251   :  { %946 = vpow2.f32 %v608_v62 }
 0x256   :  { %v562_v63 = vpop.xlane.xlu0 %561 }
 0x257   :  { %v596_v0 = vsub.f32 %v1194_v15, %v562_v63 }
 0x258   :  { %v1247_v1 = vpop.eup %940 }
 0x259   :  { %v618_v2 = vmul.f32 1.442695, %v596_v0  ;;  %v644_v3 = vsel %vm541_vm0, %v1247_v1, 0.0 }
 0x25a   :  { %v1251_v4 = vpop.eup %942  ;;  %v565_v5 = vpop.xlane.xlu1 %564  ;;  %645 = vadd.xlane.f32.xlu0 %v644_v3 }
 0x25b   :  { %v556_v6 = vpop.xlane.xlu0 %555  ;;  %948 = vpow2.f32 %v618_v2  ;;  %v597_v7 = vsub.f32 %v1200_v20, %v565_v5  ;;  %v638_v12 = vsel %vm541_vm0, %v1251_v4, 0.0 }
 0x25c   :  { %v594_v44 = vsub.f32 %v1196_v17, %v556_v6  ;;  %v1255_v8 = vpop.eup %944 }
 0x25d   :  { %v620_v9 = vmul.f32 1.442695, %v597_v7  ;;  %v647_v11 = vsel %vm541_vm0, %v1255_v8, 0.0 }
 0x25e   :  { %v614_v10 = vmul.f32 1.442695, %v594_v44  ;;  %v1261_v13 = vpop.eup %946  ;;  %648 = vadd.xlane.f32.xlu1 %v647_v11  ;;  %v559_v14 = vpop.xlane.xlu1 %558  ;;  %639 = vadd.xlane.f32.xlu0 %v638_v12 }
 0x25f   :  { %950 = vpow2.f32 %v620_v9  ;;  %v595_v15 = vsub.f32 %v1202_v22, %v559_v14  ;;  %v641_v17 = vsel %vm541_vm0, %v1261_v13, 0.0 }
 0x260   :  { %952 = vpow2.f32 %v614_v10 }
 0x261   :  { %v616_v16 = vmul.f32 1.442695, %v595_v15 }
 0x262   :  { %642 = vadd.xlane.f32.xlu1 %v641_v17 }
 0x263   :  { %954 = vpow2.f32 %v616_v16 }
 0x266   :  { %v574_v18 = vpop.xlane.xlu0 %573 }
 0x267   :  { %v600_v19 = vsub.f32 %v1210_v27, %v574_v18 }
 0x268   :  { %v1267_v20 = vpop.eup %948 }
 0x269   :  { %v626_v21 = vmul.f32 1.442695, %v600_v19  ;;  %v656_v23 = vsel %vm541_vm0, %v1267_v20, 0.0 }
 0x26a   :  { %v577_v24 = vpop.xlane.xlu1 %576  ;;  %657 = vadd.xlane.f32.xlu0 %v656_v23  ;;  %v568_v25 = vpop.xlane.xlu0 %567 }
 0x26b   :  { %956 = vpow2.f32 %v626_v21  ;;  %v601_v22 = vsub.f32 %v1216_v32, %v577_v24  ;;  %v598_v26 = vsub.f32 %v1212_v29, %v568_v25 }
 0x26c   :  { %v1273_v28 = vpop.eup %950 }
 0x26d   :  { %v1275_v30 = vpop.eup %952  ;;  %v628_v31 = vmul.f32 1.442695, %v601_v22  ;;  %v622_v27 = vmul.f32 1.442695, %v598_v26  ;;  %v659_v33 = vsel %vm541_vm0, %v1273_v28, 0.0 }
 0x26e   :  { %v571_v35 = vpop.xlane.xlu1 %570  ;;  %660 = vadd.xlane.f32.xlu1 %v659_v33  ;;  %v650_v36 = vsel %vm541_vm0, %v1275_v30, 0.0 }
 0x26f   :  { %958 = vpow2.f32 %v628_v31  ;;  %v599_v37 = vsub.f32 %v1218_v34, %v571_v35  ;;  %651 = vadd.xlane.f32.xlu0 %v650_v36 }
 0x270   :  { %v1282_v32 = vpop.eup %954  ;;  %960 = vpow2.f32 %v622_v27 }
 0x271   :  { %v624_v29 = vmul.f32 1.442695, %v599_v37  ;;  %v653_v38 = vsel %vm541_vm0, %v1282_v32, 0.0 }
 0x272   :  { %654 = vadd.xlane.f32.xlu1 %v653_v38 }
 0x273   :  { %962 = vpow2.f32 %v624_v29 }
 0x278   :  { %v1286_v39 = vpop.eup %956  ;;  %v580_v41 = vpop.xlane.xlu0 %579 }
 0x279   :  { %v602_v43 = vsub.f32 %v1226_v40, %v580_v41  ;;  %v668_v45 = vsel %vm541_vm0, %v1286_v39, 0.0 }
 0x27a   :  { %669 = vadd.xlane.f32.xlu0 %v668_v45 }
 0x27b   :  { %v630_v34 = vmul.f32 1.442695, %v602_v43 }
 0x27c   :  { %v1291_v48 = vpop.eup %958  ;;  %v583_v49 = vpop.xlane.xlu1 %582 }
 0x27d   :  { %v586_v50 = vpop.xlane.xlu0 %585  ;;  %v1293_v51 = vpop.eup %960  ;;  %964 = vpow2.f32 %v630_v34  ;;  %v603_v52 = vsub.f32 %v1232_v46, %v583_v49  ;;  %v671_v54 = vsel %vm541_vm0, %v1291_v48, 0.0 }
 0x27e   :  { %v604_v53 = vsub.f32 %v1228_v42, %v586_v50  ;;  %672 = vadd.xlane.f32.xlu1 %v671_v54  ;;  %v662_v40 = vsel %vm541_vm0, %v1293_v51, 0.0 }
 0x27f   :  { %v632_v55 = vmul.f32 1.442695, %v603_v52  ;;  %663 = vadd.xlane.f32.xlu0 %v662_v40 }
 0x280   :  { %v634_v56 = vmul.f32 1.442695, %v604_v53  ;;  %v1301_v57 = vpop.eup %962  ;;  %v589_v58 = vpop.xlane.xlu1 %588 }
 0x281   :  { %966 = vpow2.f32 %v632_v55  ;;  %v605_v59 = vsub.f32 %v1234_v47, %v589_v58  ;;  %v665_v46 = vsel %vm541_vm0, %v1301_v57, 0.0 }
 0x282   :  { %968 = vpow2.f32 %v634_v56  ;;  %666 = vadd.xlane.f32.xlu1 %v665_v46 }
 0x283   :  { %v636_v42 = vmul.f32 1.442695, %v605_v59 }
 0x285   :  { %970 = vpow2.f32 %v636_v42 }
 0x28a   :  { %v1306_v60 = vpop.eup %964 }
 0x28b   :  { %v674_v61 = vsel %vm541_vm0, %v1306_v60, 0.0 }
 0x28c   :  { %675 = vadd.xlane.f32.xlu0 %v674_v61 }
 0x28e   :  { %v1310_v62 = vpop.eup %966 }
 0x28f   :  { %v1312_v63 = vpop.eup %968  ;;  %v677_v47 = vsel %vm541_vm0, %v1310_v62, 0.0 }
 0x290   :  { %678 = vadd.xlane.f32.xlu1 %v677_v47  ;;  %v680_v0 = vsel %vm541_vm0, %v1312_v63, 0.0 }
 0x291   :  { %681 = vadd.xlane.f32.xlu0 %v680_v0 }
 0x292   :  { %v1318_v2 = vpop.eup %970 }
 0x293   :  { %v683_v3 = vsel %vm541_vm0, %v1318_v2, 0.0 }
 0x294   :  { %684 = vadd.xlane.f32.xlu1 %v683_v3 }
 0x2e3   :  { %v646_v5 = vpop.xlane.xlu0 %645 }
 0x2e4   :  { %972 = vrcp.f32 %v646_v5 }
 0x2e7   :  { %v649_v6 = vpop.xlane.xlu1 %648  ;;  %v640_v7 = vpop.xlane.xlu0 %639 }
 0x2e8   :  { %974 = vrcp.f32 %v649_v6 }
 0x2e9   :  { %976 = vrcp.f32 %v640_v7 }
 0x2eb   :  { %v643_v44 = vpop.xlane.xlu1 %642 }
 0x2ec   :  { %978 = vrcp.f32 %v643_v44 }
 0x2f1   :  { %v973_v9 = vpop.eup %972 }
 0x2f2   :  { %v704_v10 = vmul.f32 %v973_v9, %v1247_v1 }
 0x2f3   :  { %v658_v11 = vpop.xlane.xlu0 %657 }
 0x2f4   :  { %720 = vst.msk [vmem:[%s1407_s5 + $0x10] sm:$0xff] %vm541_vm0, %v704_v10  ;;  %980 = vrcp.f32 %v658_v11 }
 0x2f5   :  { %v975_v12 = vpop.eup %974 }
 0x2f6   :  { %v977_v14 = vpop.eup %976  ;;  %v705_v15 = vmul.f32 %v975_v12, %v1255_v8 }
 0x2f7   :  { %v702_v16 = vmul.f32 %v977_v14, %v1251_v4  ;;  %v661_v17 = vpop.xlane.xlu1 %660 }
 0x2f8   :  { %721 = vst.msk [vmem:[%s1407_s5 + $0x18] sm:$0xff] %vm541_vm0, %v705_v15  ;;  %982 = vrcp.f32 %v661_v17  ;;  %v652_v1 = vpop.xlane.xlu0 %651 }
 0x2f9   :  { %v979_v18 = vpop.eup %978  ;;  %718 = vst.msk [vmem:[%s1407_s5] sm:$0xff] %vm541_vm0, %v702_v16  ;;  %984 = vrcp.f32 %v652_v1 }
 0x2fa   :  { %v703_v19 = vmul.f32 %v979_v18, %v1261_v13 }
 0x2fb   :  { %v655_v8 = vpop.xlane.xlu1 %654 }
 0x2fc   :  { %719 = vst.msk [vmem:[%s1407_s5 + $0x8] sm:$0xff] %vm541_vm0, %v703_v19  ;;  %986 = vrcp.f32 %v655_v8 }
 0x301   :  { %v981_v4 = vpop.eup %980 }
 0x302   :  { %v708_v21 = vmul.f32 %v981_v4, %v1267_v20 }
 0x303   :  { %v670_v23 = vpop.xlane.xlu0 %669 }
 0x304   :  { %724 = vst.msk [vmem:[%s1407_s5 + $0x30] sm:$0xff] %vm541_vm0, %v708_v21  ;;  %988 = vrcp.f32 %v670_v23 }
 0x305   :  { %v983_v24 = vpop.eup %982 }
 0x306   :  { %v985_v25 = vpop.eup %984  ;;  %v709_v13 = vmul.f32 %v983_v24, %v1273_v28 }
 0x307   :  { %v706_v22 = vmul.f32 %v985_v25, %v1275_v30  ;;  %v673_v26 = vpop.xlane.xlu1 %672 }
 0x308   :  { %725 = vst.msk [vmem:[%s1407_s5 + $0x38] sm:$0xff] %vm541_vm0, %v709_v13  ;;  %990 = vrcp.f32 %v673_v26  ;;  %v664_v20 = vpop.xlane.xlu0 %663 }
 0x309   :  { %v987_v31 = vpop.eup %986  ;;  %722 = vst.msk [vmem:[%s1407_s5 + $0x20] sm:$0xff] %vm541_vm0, %v706_v22  ;;  %992 = vrcp.f32 %v664_v20 }
 0x30a   :  { %v707_v27 = vmul.f32 %v987_v31, %v1282_v32 }
 0x30b   :  { %v667_v28 = vpop.xlane.xlu1 %666 }
 0x30c   :  { %723 = vst.msk [vmem:[%s1407_s5 + $0x28] sm:$0xff] %vm541_vm0, %v707_v27  ;;  %994 = vrcp.f32 %v667_v28 }
 0x311   :  { %v989_v30 = vpop.eup %988 }
 0x312   :  { %v712_v33 = vmul.f32 %v989_v30, %v1286_v39 }
 0x314   :  { %728 = vst.msk [vmem:[%s1407_s5 + $0x50] sm:$0xff] %vm541_vm0, %v712_v33 }
 0x315   :  { %v991_v35 = vpop.eup %990  ;;  %v676_v36 = vpop.xlane.xlu0 %675 }
 0x316   :  { %v993_v37 = vpop.eup %992  ;;  %v713_v32 = vmul.f32 %v991_v35, %v1291_v48  ;;  %996 = vrcp.f32 %v676_v36 }
 0x317   :  { %v710_v29 = vmul.f32 %v993_v37, %v1293_v51 }
 0x318   :  { %729 = vst.msk [vmem:[%s1407_s5 + $0x58] sm:$0xff] %vm541_vm0, %v713_v32 }
 0x319   :  { %v995_v38 = vpop.eup %994  ;;  %726 = vst.msk [vmem:[%s1407_s5 + $0x40] sm:$0xff] %vm541_vm0, %v710_v29  ;;  %v679_v39 = vpop.xlane.xlu1 %678 }
 0x31a   :  { %v711_v41 = vmul.f32 %v995_v38, %v1301_v57  ;;  %998 = vrcp.f32 %v679_v39  ;;  %v682_v43 = vpop.xlane.xlu0 %681 }
 0x31b   :  { %1000 = vrcp.f32 %v682_v43 }
 0x31c   :  { %727 = vst.msk [vmem:[%s1407_s5 + $0x48] sm:$0xff] %vm541_vm0, %v711_v41 }
 0x31d   :  { %v685_v45 = vpop.xlane.xlu1 %684 }
 0x31e   :  { %1002 = vrcp.f32 %v685_v45 }
 0x323   :  { %v997_v34 = vpop.eup %996 }
 0x324   :  { %v714_v48 = vmul.f32 %v997_v34, %v1306_v60 }
 0x326   :  { %730 = vst.msk [vmem:[%s1407_s5 + $0x60] sm:$0xff] %vm541_vm0, %v714_v48 }
 0x327   :  { %v999_v49 = vpop.eup %998 }
 0x328   :  { %v1001_v50 = vpop.eup %1000  ;;  %v715_v51 = vmul.f32 %v999_v49, %v1310_v62 }
 0x329   :  { %v716_v52 = vmul.f32 %v1001_v50, %v1312_v63 }
 0x32a   :  { %731 = vst.msk [vmem:[%s1407_s5 + $0x68] sm:$0xff] %vm541_vm0, %v715_v51 }
 0x32b   :  { %v1003_v53 = vpop.eup %1002  ;;  %732 = vst.msk [vmem:[%s1407_s5 + $0x70] sm:$0xff] %vm541_vm0, %v716_v52 }
 0x32c   :  { %v717_v54 = vmul.f32 %v1003_v53, %v1318_v2 }
 0x32e   :  { %733 = vst.msk [vmem:[%s1407_s5 + $0x78] sm:$0xff] %vm541_vm0, %v717_v54 }

</bundles_post_ra>
